<compile_context>
chip_gen: v5e
topology: v5e:2x2
jax: 0.10.0
libtpu: 0.0.40
codegen_flags: <defaults>
</compile_context>

<pallas_src>
import jax
import jax.numpy as jnp
from jax.experimental import pallas as pl
from jax.experimental.pallas import tpu as pltpu


def avg_emb_kernel(emb_ref, mask_ref, out_ref):
    # emb_ref : (TB, S, H) VMEM tile, native input dtype
    # mask_ref: (TB, S)    f32 {0,1} mask tile
    # out_ref : (TB, H)    output tile (embedding dtype)
    emb = emb_ref[...].astype(jnp.float32)        # cast in-kernel, accumulate in f32
    mask = mask_ref[...]                          # (TB, S), f32

    # masked sum over the sequence axis -> (TB, H)
    summed = jnp.sum(emb * mask[:, :, None], axis=1)

    # lengths straight from the float mask; single scale = length_mask / max(len, 1)
    lengths = jnp.sum(mask, axis=-1, keepdims=True)               # (TB, 1)
    inv = pl.reciprocal(jnp.maximum(lengths, 1.0), approx=False)  # exact 1/x, tiny vector
    scale = jnp.where(lengths > 0.0, inv, 0.0)                    # (TB, 1)

    out_ref[...] = (summed * scale).astype(out_ref.dtype)


def average_embedding(embedding: jax.Array, mask: jax.Array, *, block_b: int = 8) -> jax.Array:
    """embedding: (B, S, H) any float dtype; mask: (B, S) {0,1}; returns (B, H)."""
    B, S, H = embedding.shape
    mask = mask.astype(jnp.float32)

    # Batch tile: TB rows per grid step.  TB must be a multiple of 8 or equal
    # the (padded) full batch so the mask/output sublane dim tiles cleanly.
    tb = min(block_b, B)
    if tb < B:
        assert tb % 8 == 0, "batch tile must be a multiple of 8 when tiling the batch"
    pad = (-B) % tb
    if pad:
        # Padded rows have an all-zero mask -> output 0, sliced off below.
        embedding = jnp.pad(embedding, ((0, pad), (0, 0), (0, 0)))
        mask = jnp.pad(mask, ((0, pad), (0, 0)))
    Bp = B + pad

    out = pl.pallas_call(
        avg_emb_kernel,
        out_shape=jax.ShapeDtypeStruct((Bp, H), embedding.dtype),
        grid=(Bp // tb,),
        in_specs=[
            pl.BlockSpec((tb, S, H), lambda b: (b, 0, 0)),  # native dtype, no wrapper upcast
            pl.BlockSpec((tb, S), lambda b: (b, 0)),
        ],
        out_specs=pl.BlockSpec((tb, H), lambda b: (b, 0)),
        compiler_params=pltpu.CompilerParams(
            dimension_semantics=("parallel",),          # shards batch across TCs on v7x
            vmem_limit_bytes=64 * 1024 * 1024,          # allow large double-buffered blocks
        ),
    )(embedding, mask)

    return out[:B] if pad else out


def average_embedding_ref(embedding, mask):
    # Pure-JAX reference mirroring the PyTorch module exactly.
    emb = embedding.astype(jnp.float32) * mask[..., None].astype(jnp.float32)
    emb = emb.sum(1)
    lengths = mask.astype(jnp.int32).sum(-1)
    length_mask = lengths > 0
    lengths = jnp.maximum(lengths, 1)
    emb = emb / lengths[..., None].astype(jnp.float32)
    emb = emb * length_mask.astype(jnp.float32)[..., None]
    return emb


if __name__ == "__main__":
    key = jax.random.PRNGKey(0)
    k1, k2, k3, k4 = jax.random.split(key, 4)

    # --- Test 1: f32, small shapes, one fully-masked-out row (lengths==0 path) ---
    B, S, H = 2, 8, 32
    emb = jax.random.normal(k1, (B, S, H), dtype=jnp.float32)
    mask = (jax.random.uniform(k2, (B, S)) > 0.4).astype(jnp.float32)
    mask = mask.at[1, :].set(0.0)

    out = jax.block_until_ready(average_embedding(emb, mask))
    ref = average_embedding_ref(emb, mask)
    assert out.shape == (B, H) and out.dtype == jnp.float32
    assert jnp.allclose(out, ref, atol=1e-5, rtol=1e-5), "f32 mismatch vs reference"

    # --- Test 2: bf16 input (native-dtype DMA), batch not a multiple of TB=8 ---
    B2, S2, H2 = 10, 8, 128
    emb2 = jax.random.normal(k3, (B2, S2, H2), dtype=jnp.bfloat16)
    mask2 = (jax.random.uniform(k4, (B2, S2)) > 0.3).astype(jnp.float32)
    mask2 = mask2.at[3, :].set(0.0)

    out2 = jax.block_until_ready(average_embedding(emb2, mask2))
    ref2 = average_embedding_ref(emb2, mask2)
    assert out2.shape == (B2, H2) and out2.dtype == jnp.bfloat16
    assert jnp.allclose(out2.astype(jnp.float32), ref2, atol=2e-2, rtol=2e-2), \
        "bf16 mismatch vs reference"

    print("KERNEL_OK")
</pallas_src>

<mosaic_0001>
module attributes {stable_mosaic.version = 11 : i64} {
  func.func @avg_emb_kernel(%arg0: i32, %arg1: memref<2x8x32xf32, #tpu.memory_space<vmem>>, %arg2: memref<2x8xf32, #tpu.memory_space<vmem>>, %arg3: memref<2x32xf32, #tpu.memory_space<vmem>>) attributes {dimension_semantics = [#tpu.dimension_semantics<parallel>], iteration_bounds = array<i64: 1>, scalar_prefetch = 0 : i64, scratch_operands = 0 : i64, tpu.core_type = #tpu.core_type<tc>, window_params = [{transform_indices = @transform_0, window_bounds = array<i64: 2, 8, 32>}, {transform_indices = @transform_1, window_bounds = array<i64: 2, 8>}, {transform_indices = @transform_2, window_bounds = array<i64: 2, 32>}]} {
    %c0 = arith.constant 0 : index
    %c0_0 = arith.constant 0 : index
    %c0_1 = arith.constant 0 : index
    %0 = vector.load %arg1[%c0, %c0_0, %c0_1] : memref<2x8x32xf32, #tpu.memory_space<vmem>>, vector<2x8x32xf32>
    %c0_2 = arith.constant 0 : index
    %c0_3 = arith.constant 0 : index
    %1 = vector.load %arg2[%c0_2, %c0_3] : memref<2x8xf32, #tpu.memory_space<vmem>>, vector<2x8xf32>
    %2 = vector.shape_cast %1 : vector<2x8xf32> to vector<2x8x1xf32>
    %3 = vector.broadcast %2 : vector<2x8x1xf32> to vector<2x8x32xf32>
    %4 = arith.mulf %0, %3 : vector<2x8x32xf32>
    %cst = arith.constant dense<0.000000e+00> : vector<2x32xf32>
    %5 = vector.multi_reduction <add>, %4, %cst [1] : vector<2x8x32xf32> to vector<2x32xf32>
    %cst_4 = arith.constant dense<0.000000e+00> : vector<2xf32>
    %6 = vector.multi_reduction <add>, %1, %cst_4 [1] : vector<2x8xf32> to vector<2xf32>
    %7 = vector.shape_cast %6 : vector<2xf32> to vector<2x1xf32>
    %cst_5 = arith.constant 1.000000e+00 : f32
    %8 = vector.broadcast %cst_5 : f32 to vector<2x1xf32>
    %9 = arith.maximumf %7, %8 : vector<2x1xf32>
    %10 = tpu.reciprocal %9 : vector<2x1xf32> -> vector<2x1xf32>
    %cst_6 = arith.constant 0.000000e+00 : f32
    %11 = vector.broadcast %cst_6 : f32 to vector<2x1xf32>
    %12 = arith.cmpf ogt, %7, %11 : vector<2x1xf32>
    %cst_7 = arith.constant 0.000000e+00 : f32
    %13 = vector.broadcast %cst_7 : f32 to vector<2x1xf32>
    %14 = arith.select %12, %10, %13 : vector<2x1xi1>, vector<2x1xf32>
    %15 = vector.broadcast %14 : vector<2x1xf32> to vector<2x32xf32>
    %16 = arith.mulf %5, %15 : vector<2x32xf32>
    %c0_8 = arith.constant 0 : index
    %c0_9 = arith.constant 0 : index
    %17 = vector.load %arg3[%c0_8, %c0_9] : memref<2x32xf32, #tpu.memory_space<vmem>>, vector<2x32xf32>
    tpu.vector_store %arg3[%c0_8, %c0_9], %16 {strides = array<i32>} : memref<2x32xf32, #tpu.memory_space<vmem>>, vector<2x32xf32>,
    return
  }
  func.func @transform_0(%arg0: i32) -> (i32, i32, i32) {
    %c0_i32 = arith.constant 0 : i32
    %c0_i32_0 = arith.constant 0 : i32
    %c0_i32_1 = arith.constant 0 : i32
    return %arg0, %c0_i32, %c0_i32_0 : i32, i32, i32
  }
  func.func @transform_1(%arg0: i32) -> (i32, i32) {
    %c0_i32 = arith.constant 0 : i32
    %c0_i32_0 = arith.constant 0 : i32
    return %arg0, %c0_i32 : i32, i32
  }
  func.func @transform_2(%arg0: i32) -> (i32, i32) {
    %c0_i32 = arith.constant 0 : i32
    %c0_i32_0 = arith.constant 0 : i32
    return %arg0, %c0_i32 : i32, i32
  }
}

</mosaic_0001>

<bundles_post_ra>
// kernel: tpu_custom_call.1
= control target key start
LH: loop header
LB: loop body
LE: loop exit
PB: predicated region body
PF: predicated region fallthrough
CT: control target
= control target key end

     0   :  { %7 = vsyncpa [#allocation3], 0  ;;  %s247_s0 = inlined_call_operand.hbm [shape: f32[2,8,32], index: 0, kind: input, shape index: {}]   ;;  %s248_s1 = inlined_call_operand.hbm [shape: f32[2,8], index: 1, kind: input, shape index: {}]   ;;  %s249_s2 = inlined_call_operand.hbm [shape: f32[2,32], index: 2, kind: output, shape index: {}]  }
   0x1   :  { %8 = vsyncpa [#allocation6], 0 }
   0x2   :  { %9 = vsyncpa [#allocation4], 0  ;;  %s14_s11 = sshll.u32 %s247_s0, 4  ;;  %s216_s12 = smov [#allocation2]   ;;  %s15_s11 = int_to_ptr.hbm [resolvable:$true] %s14_s11 }
   0x3   :  { %s16_s13 = sshll.u32 %s216_s12, 4  ;;  %s28_s16 = sshll.u32 %s248_s1, 4  ;;  %s17_s13 = int_to_ptr.vmem [resolvable:$true] %s16_s13  ;;  %s29_s16 = int_to_ptr.hbm [resolvable:$true] %s28_s16 }
   0x4   :  { %s217_s17 = smov 128   ;;  %s218_s18 = smov 8  }
   0x5   :  { %22 = dma.hbm_to_vmem [thread:$0]  %s15_s11, 256, %s17_s13, [#allocation3], %s217_s17, %s217_s17, %s218_s18  }
   0x6   :  { %s219_s19 = smov [#allocation5]  }
   0x7   :  { %s30_s20 = sshll.u32 %s219_s19, 4  ;;  %s31_s20 = int_to_ptr.vmem [resolvable:$true] %s30_s20 }
   0x8   :  { %33 = dma.hbm_to_vmem [thread:$0]  %s29_s16, 32, %s31_s20, [#allocation6]  }
   0x9   :  { %210 = dma.done.wait [#allocation3], 256  }
   0xa   :  { %211 = vsyncadd [#allocation3], 4294967040 }
   0xb   :  { %212 = dma.done.wait [#allocation6], 32  }
   0xc   :  { %213 = vsyncadd [#allocation6], 4294967264  ;;  %v46_v0 = vlaneseq  ;;  %vm76_vm0 = vcmask 58368   ;;  %v44_v2 = vld [vmem:[#allocation5] sm:$0x3]  ;;  %v42_v9 = vld [vmem:[#allocation2] sm:$0xff] }
   0xd   :  { %v77_v3 = vsel %vm76_vm0, %v44_v2, 0.0  ;;  %v45_v4 = vperm.slane %v44_v2, 0  ;;  %v52_v5 = vperm.slane %v44_v2, 1  ;;  %vm61_vm1 = vcmask 261120   ;;  %v43_v18 = vld [vmem:[#allocation2 + $0x8] sm:$0xff]  ;;  %s220_s0 = smov [#allocation7]  }
   0xe   :  { %v47_v1 = vshrl.u32 %v46_v0, 7  ;;  %78 = vadd.xlane.f32.xlu0 %v77_v3  ;;  %s116_s1 = sshll.u32 %s220_s0, 4  ;;  %s118_s23 = sshll.u32 %s249_s2, 4  ;;  %vm106_vm7 = vcmask 1041409   ;;  %vm109_vm8 = vcmask 254976   ;;  %s117_s1 = int_to_ptr.vmem [resolvable:$true] %s116_s1  ;;  %s119_s23 = int_to_ptr.hbm [resolvable:$true] %s118_s23 }
  0x10   :  { %135 = vset.pattern.permute.xlu1 %v47_v1  ;;  %134 = vset.pattern.permute.xlu0 %v47_v1 }
  0x18   :  { %50 = vperm.xlu1 %135, %v45_v4  }
  0x22   :  { %57 = vperm.xlu0 %134, %v52_v5  }
  0x81   :  { %v79_v6 = vpop.xlane.xlu0 %78 }
  0x82   :  { %v80_v7 = vmax.f32 %v79_v6, 1.0  ;;  %vm95_vm6 = vcmp.gt.f32.partialorder %v79_v6, 0.0 }
  0x84   :  { %136 = vrcp.f32 %v80_v7  ;;  %v92_v22 = vand.u32 2147483648, %v80_v7  ;;  %vm86_vm3 = vweird.f32 %v80_v7  ;;  %v90_v24 = vand.u32 2147483647, %v80_v7 }
  0x86   :  { %v93_v28 = vor.u32 1.1754944e-38, %v92_v22  ;;  %vm91_vm5 = vcmp.eq.f32.partialorder %v90_v24, 8.507059e+37 }
  0x8a   :  { %v51_v8 = vpop.permute.xlu1 %50  ;;  %v137_v11 = vpop.eup %136 }
  0x8b   :  { %v59_v10 = vmul.f32 %v51_v8, %v42_v9  ;;  %v82_v12 = vmul.f32 %v137_v11, %v80_v7  ;;  %vm87_vm2 = vweird.f32 %v137_v11 }
  0x8c   :  { %vm88_vm4 = vmor %vm86_vm3, %vm87_vm2 }
  0x8d   :  { %v62_v13 = vsel %vm61_vm1, %v59_v10, 0.0  ;;  %v83_v14 = vsub.f32 1.0, %v82_v12 }
  0x8e   :  { %v63_v15 = vrot.slane %v62_v13, 4 }
  0x8f   :  { %v84_v16 = vmul.f32 %v137_v11, %v83_v14 }
  0x90   :  { %v64_v17 = vadd.f32 %v63_v15, %v62_v13 }
  0x91   :  { %v85_v20 = vadd.f32 %v137_v11, %v84_v16 }
  0x92   :  { %v65_v23 = vrot.slane %v64_v17, 2 }
  0x93   :  { %v89_v27 = vsel %vm88_vm4, %v137_v11, %v85_v20 }
  0x94   :  { %v58_v19 = vpop.permute.xlu0 %57  ;;  %v66_v29 = vadd.f32 %v65_v23, %v64_v17  ;;  %v94_v31 = vsel %vm91_vm5, %v93_v28, %v89_v27 }
  0x95   :  { %v60_v21 = vmul.f32 %v58_v19, %v43_v18  ;;  %v96_v35 = vsel %vm95_vm6, %v94_v31, 0.0 }
  0x96   :  { %v67_v33 = vrot.slane %v66_v29, 1  ;;  %v98_v37 = vrot.slane %v96_v35, 1 }
  0x97   :  { %v69_v25 = vsel %vm61_vm1, %v60_v21, 0.0 }
  0x98   :  { %v70_v26 = vrot.slane %v69_v25, 4  ;;  %v68_v38 = vadd.f32 %v67_v33, %v66_v29 }
  0x9a   :  { %v71_v30 = vadd.f32 %v70_v26, %v69_v25  ;;  %v101_v41 = vmul.f32 %v96_v35, %v68_v38 }
  0x9c   :  { %v72_v32 = vrot.slane %v71_v30, 2 }
  0x9e   :  { %v73_v34 = vadd.f32 %v72_v32, %v71_v30 }
  0xa0   :  { %v74_v36 = vrot.slane %v73_v34, 1 }
  0xa2   :  { %v75_v39 = vadd.f32 %v74_v36, %v73_v34 }
  0xa4   :  { %v102_v40 = vmul.f32 %v98_v37, %v75_v39 }
  0xa6   :  { %v105_v42 = vrot.slane %v102_v40, 7 }
  0xa8   :  { %v107_v43 = vsel %vm106_vm7, %v105_v42, %v101_v41 }
  0xa9   :  { %110 = vst.msk [vmem:[#allocation7] sm:$0x3] %vm109_vm8, %v107_v43 }
  0xaa   :  { %121 = dma.vmem_to_hbm [thread:$0]  %s117_s1, 32, %s119_s23, [#allocation4]  }
  0xab   :  { %214 = dma.done.wait [#allocation4], 32  }
  0xac   :  { %215 = vsyncadd [#allocation4], 4294967264 }
  0xad   :  { %126 = vsyncpa [#allocation3], 1 }
  0xae   :  { %127 = vsyncpa [#allocation6], 1 }
  0xaf   :  { %128 = vsyncpa [#allocation4], 1 }

</bundles_post_ra>
